<compile_context>
chip_gen: v7x
topology: tpu7x:2x2x1
jax: 0.10.0
libtpu: 0.0.40
codegen_flags: <defaults>
</compile_context>

<pallas_src>
import math
from functools import partial

import jax
import jax.numpy as jnp
from jax.experimental import pallas as pl
from jax.experimental.pallas import tpu as pltpu

GELU_CONST = math.sqrt(2.0 / math.pi)
MATMUL_DTYPE = jnp.bfloat16      # MXU input dtype for the three wide matmuls
LANE = 128
SUBLANE = 8


def _round_up(n, m):
    return ((n + m - 1) // m) * m


def _vmem_budget_bytes():
    """Generation-aware VMEM budget with headroom below physical capacity."""
    cap = 64 * 1024 * 1024
    try:
        cap = int(pltpu.get_tpu_info().vmem_capacity_bytes)
    except Exception:
        pass
    if cap >= 96 * 1024 * 1024:                       # v5e / v6e (128 MiB physical)
        return min(cap - 24 * 1024 * 1024, 104 * 1024 * 1024)
    # v7x (64 MiB physical): leave ~10 MiB headroom for compiler scratch / spill
    return max(24 * 1024 * 1024, min(cap - 10 * 1024 * 1024, 54 * 1024 * 1024))


_VMEM_BUDGET = _vmem_budget_bytes()
_SINGLE_BUFFER_WEIGHTS = None        # decided by a one-time probe on first call


def _new_gelu(x):
    # NewGELU: 0.5 * x * (1 + tanh(sqrt(2/pi) * (x + 0.044715 * x^3)))  [f32 VPU/EUP]
    return 0.5 * x * (1.0 + jnp.tanh(GELU_CONST * (x + 0.044715 * x * x * x)))


def ffmodel_kernel(x_ref, w1_ref, b1_ref, w2_ref, b2_ref, w3_ref, b3_ref,
                   w4_ref, b4_ref, t_ref, wt_ref, y_ref, wse_ref):
    # x tile: (TILE_B, Dp) bf16 streamed per grid step; weights are VMEM-resident.
    h = jnp.dot(x_ref[...], w1_ref[...],
                preferred_element_type=jnp.float32) + b1_ref[...]
    h = _new_gelu(h)
    # TODO(synk): dropout (use_dropout=True) path not implemented -- deterministic
    # inference path only (would need pltpu.prng_seed + prng_random_bits masking).

    h = jnp.dot(h.astype(w2_ref.dtype), w2_ref[...],
                preferred_element_type=jnp.float32) + b2_ref[...]
    h = _new_gelu(h)

    h = jnp.dot(h.astype(w3_ref.dtype), w3_ref[...],
                preferred_element_type=jnp.float32) + b3_ref[...]
    h = _new_gelu(h)

    # Final layer (out_features == 1) on the MXU: (TILE_B, H2p) @ (H2p, 1), f32.
    y = jnp.dot(h, w4_ref[...], preferred_element_type=jnp.float32) + b4_ref[0, 0]
    y_ref[...] = y                                        # (TILE_B, 1)

    # Per-row weighted squared error; padded rows carry weight 0 so they
    # contribute nothing.  The /B mean happens once in the wrapper, so the
    # "parallel" batch axis needs no cross-tile accumulator.
    d = y - t_ref[...]
    wse_ref[...] = wt_ref[...] * d * d                    # (TILE_B, 1)


# ---------------- footprint accounting (shared by fit-check and vmem_limit) ---

def _resident_bytes(Dp, H2p, H3p):
    wbytes = jnp.dtype(MATMUL_DTYPE).itemsize
    return (wbytes * (Dp * H2p + H2p * H3p + H3p * H2p)   # w1, w2, w3 (bf16)
            + 4 * (2 * H2p + H3p)                         # b1, b2, b3 (f32)
            + 4 * H2p)                                    # w4 column (f32)


def _per_row_stream_bytes(Dp):
    # streamed per-batch-row blocks (pipeline double-buffers these):
    # x bf16, targets f32, weights f32, y f32, wse f32
    return 2 * Dp + 4 * 4


def _per_row_work_bytes(H2p, H3p):
    # f32 intermediates + bf16 re-cast copies feeding the next matmul
    return 4 * (2 * H2p + H3p) + 2 * (2 * H2p + H3p)


def _footprint_bytes(tile_b, Dp, H2p, H3p, resident_eff):
    return (resident_eff
            + tile_b * (2 * _per_row_stream_bytes(Dp)     # double-buffered streams
                        + _per_row_work_bytes(H2p, H3p)))


def _choose_tile_b(batch, Dp, H2p, H3p, resident_eff, budget):
    def fits(tile):
        return _footprint_bytes(tile, Dp, H2p, H3p, resident_eff) <= budget

    if batch <= 256:
        tile = _round_up(max(batch, 1), SUBLANE)
        if fits(tile):
            return tile

    best = None
    for tile in (1024, 512, 256, 128):
        if not fits(tile):
            continue
        n = -(-batch // tile)
        pad = n * tile - batch
        # least batch padding first; prefer an even tile count (dual-TC v7x);
        # then the largest tile (amortizes ~0.35 us/step grid overhead).
        key = (pad, 0 if n % 2 == 0 else 1, -tile)
        if best is None or key < best[0]:
            best = (key, tile)
    if best is not None:
        return best[1]
    # TODO(synk): weights no longer fit VMEM-resident (very large input_size);
    # would need a weight-streaming grid axis / pltpu.emit_pipeline over K/N.
    return 128


# ---------------- spec builders ------------------------------------------------

def _resident_spec(shape, single_buffer):
    if single_buffer:
        try:
            return pl.BlockSpec(shape, lambda i: (0, 0),
                                pipeline_mode=pl.Buffered(1))
        except Exception:
            pass
    return pl.BlockSpec(shape, lambda i: (0, 0))


def _build_specs(tile_b, Dp, H2p, H3p, single_buffer):
    def col_stream():
        return pl.BlockSpec((tile_b, 1), lambda i: (i, 0))

    in_specs = [
        pl.BlockSpec((tile_b, Dp), lambda i: (i, 0)),           # x (streamed)
        _resident_spec((Dp, H2p), single_buffer),               # w1
        _resident_spec((1, H2p), single_buffer),                # b1
        _resident_spec((H2p, H3p), single_buffer),              # w2
        _resident_spec((1, H3p), single_buffer),                # b2
        _resident_spec((H3p, H2p), single_buffer),              # w3
        _resident_spec((1, H2p), single_buffer),                # b3
        _resident_spec((H2p, 1), single_buffer),                # w4 (column)
        pl.BlockSpec(memory_space=pltpu.MemorySpace.SMEM),      # b4 scalar
        col_stream(),                                           # targets
        col_stream(),                                           # weights
    ]
    out_specs = (
        pl.BlockSpec((tile_b, 1), lambda i: (i, 0)),            # y
        pl.BlockSpec((tile_b, 1), lambda i: (i, 0)),            # weighted sq err
    )
    return in_specs, out_specs


# ---------------- params ------------------------------------------------------

def prepare_params(params):
    """One-time pad + bf16 cast of the weights into MXU/lane-aligned layout.

    Call once and reuse the result for every forward (avoids re-reading /
    re-writing the weights from HBM on every call)."""
    w1, b1, w2, b2, w3, b3, w4, b4 = params
    f32 = jnp.float32
    D, H2 = w1.shape
    H3 = w2.shape[1]
    Dp, H2p, H3p = (_round_up(d, LANE) for d in (D, H2, H3))

    w1p = jnp.pad(w1.astype(f32), ((0, Dp - D), (0, H2p - H2))).astype(MATMUL_DTYPE)
    w2p = jnp.pad(w2.astype(f32), ((0, H2p - H2), (0, H3p - H3))).astype(MATMUL_DTYPE)
    w3p = jnp.pad(w3.astype(f32), ((0, H3p - H3), (0, H2p - H2))).astype(MATMUL_DTYPE)
    b1p = jnp.pad(b1.reshape(1, -1).astype(f32), ((0, 0), (0, H2p - H2)))
    b2p = jnp.pad(b2.reshape(1, -1).astype(f32), ((0, 0), (0, H3p - H3)))
    b3p = jnp.pad(b3.reshape(1, -1).astype(f32), ((0, 0), (0, H2p - H2)))
    w4p = jnp.pad(w4.reshape(-1, 1).astype(f32), ((0, H2p - H2), (0, 0)))   # (H2p, 1)
    b4p = b4.reshape(1, 1).astype(f32)
    prepared = (w1p, b1p, w2p, b2p, w3p, b3p, w4p, b4p)
    return jax.tree_util.tree_map(jax.device_put, prepared)


# ---------------- forward -------------------------------------------------------

@partial(jax.jit, static_argnames=("single_buffer",))
def _ffmodel_forward_impl(x, prepared, targets, weights, *, single_buffer):
    w1p, b1p, w2p, b2p, w3p, b3p, w4p, b4p = prepared
    f32 = jnp.float32
    B, D = x.shape
    Dp, H2p = w1p.shape
    H3p = w2p.shape[1]

    resident_eff = _resident_bytes(Dp, H2p, H3p) * (1 if single_buffer else 2)
    TILE_B = _choose_tile_b(B, Dp, H2p, H3p, resident_eff, _VMEM_BUDGET)
    Bp = _round_up(B, TILE_B)
    n_tiles = Bp // TILE_B

    # per-call activation pad/cast only (weights were prepared once).
    xp = jnp.pad(x.astype(f32), ((0, Bp - B), (0, Dp - D))).astype(MATMUL_DTYPE)
    tp = jnp.pad(targets.astype(f32), (0, Bp - B)).reshape(Bp, 1)
    wtp = jnp.pad(weights.astype(f32), (0, Bp - B)).reshape(Bp, 1)

    in_specs, out_specs = _build_specs(TILE_B, Dp, H2p, H3p, single_buffer)
    out_shape = (jax.ShapeDtypeStruct((Bp, 1), f32),
                 jax.ShapeDtypeStruct((Bp, 1), f32))

    footprint = _footprint_bytes(TILE_B, Dp, H2p, H3p, resident_eff)
    vmem_limit = int(min(_VMEM_BUDGET,
                         max(16 * 1024 * 1024, footprint + 4 * 1024 * 1024)))

    flops = 2 * Bp * (Dp * H2p + H2p * H3p + H3p * H2p + H2p)
    transcendentals = Bp * (2 * H2p + H3p)
    bytes_accessed = _resident_bytes(Dp, H2p, H3p) + Bp * Dp * 2 + 4 * Bp * 4

    y_pad, wse_pad = pl.pallas_call(
        ffmodel_kernel,
        grid=(n_tiles,),
        in_specs=in_specs,
        out_specs=out_specs,
        out_shape=out_shape,
        compiler_params=pltpu.CompilerParams(
            dimension_semantics=("parallel",),
            vmem_limit_bytes=vmem_limit),
        cost_estimate=pl.CostEstimate(flops=int(flops),
                                      transcendentals=int(transcendentals),
                                      bytes_accessed=int(bytes_accessed)),
    )(xp, w1p, b1p, w2p, b2p, w3p, b3p, w4p, b4p, tp, wtp)

    y = y_pad.reshape(-1)[:B]
    loss = jnp.sum(wse_pad) / B          # true-B mean; padded rows contribute 0
    return y, loss


def _call_impl(x, prepared, targets, weights):
    """Probe Buffered(1) (single-buffered resident weights) once; fall back to
    default double-buffering if this JAX/Mosaic build rejects it."""
    global _SINGLE_BUFFER_WEIGHTS
    if _SINGLE_BUFFER_WEIGHTS is None:
        try:
            out = _ffmodel_forward_impl(x, prepared, targets, weights,
                                        single_buffer=True)
            jax.block_until_ready(out)
            _SINGLE_BUFFER_WEIGHTS = True
            return out
        except Exception:
            _SINGLE_BUFFER_WEIGHTS = False
    return _ffmodel_forward_impl(x, prepared, targets, weights,
                                 single_buffer=_SINGLE_BUFFER_WEIGHTS)


def ffmodel_forward(x, prepared_params, targets=None, weights=None):
    """Fused 4-layer MLP (NewGELU) + optional weighted-MSE loss.

    `prepared_params` must come from prepare_params(raw_params)."""
    B = x.shape[0]
    if targets is None:
        zeros = jnp.zeros((B,), jnp.float32)
        y, _ = _call_impl(x, prepared_params, zeros, zeros)
        return y.reshape(B, 1), None                 # PyTorch: no squeeze, loss=None
    if weights is None:
        weights = jnp.ones((B,), jnp.float32)
    return _call_impl(x, prepared_params, targets, weights)


# ---------------- init & references --------------------------------------------

def init_params(key, input_size):
    """Deterministic init matching _init_weights: N(0, 0.02) weights, zero bias."""
    dims = [(input_size, input_size * 2),
            (input_size * 2, input_size * 3),
            (input_size * 3, input_size * 2),
            (input_size * 2, 1)]
    params = []
    for i, (din, dout) in enumerate(dims):
        kw = jax.random.fold_in(key, i)
        w = 0.02 * jax.random.normal(kw, (din, dout), dtype=jnp.float32)
        b = jnp.zeros((1, dout), dtype=jnp.float32)
        params.extend([w, b])
    return tuple(params)


def _reference_forward_f32(x, params, targets, weights):
    w1, b1, w2, b2, w3, b3, w4, b4 = params
    h = _new_gelu(x @ w1 + b1)
    h = _new_gelu(h @ w2 + b2)
    h = _new_gelu(h @ w3 + b3)
    y = (h @ w4 + b4).reshape(-1)
    loss = jnp.mean(weights * (y - targets) ** 2)
    return y, loss


def _reference_forward_mixed(x, params, targets, weights):
    """Mimics the kernel's dtype policy: bf16 matmul inputs, f32 accumulation,
    f32 elementwise / final projection / loss."""
    w1, b1, w2, b2, w3, b3, w4, b4 = params

    def mm(a, w):
        return jnp.dot(a.astype(MATMUL_DTYPE), w.astype(MATMUL_DTYPE),
                       preferred_element_type=jnp.float32)

    h = _new_gelu(mm(x, w1) + b1)
    h = _new_gelu(mm(h, w2) + b2)
    h = _new_gelu(mm(h, w3) + b3)
    y = (jnp.dot(h, w4, preferred_element_type=jnp.float32) + b4).reshape(-1)
    loss = jnp.mean(weights * (y - targets) ** 2)
    return y, loss


if __name__ == "__main__":
    key = jax.random.PRNGKey(0)
    B, D = 8, 32  # batch, input_size

    kx, kt, kp = jax.random.split(key, 3)
    x = jax.random.normal(kx, (B, D), dtype=jnp.float32)
    targets = jax.random.normal(kt, (B,), dtype=jnp.float32)
    raw_params = init_params(kp, D)
    prepared = prepare_params(raw_params)          # one-time pad + bf16 cast

    y, loss = ffmodel_forward(x, prepared, targets)     # weights=None -> ones
    jax.block_until_ready((y, loss))
    assert y.shape == (B,)

    ones = jnp.ones((B,), jnp.float32)
    y_m, loss_m = _reference_forward_mixed(x, raw_params, targets, ones)
    assert jnp.allclose(y, y_m, atol=1e-5, rtol=1e-4)
    assert jnp.allclose(loss, loss_m, atol=1e-5, rtol=1e-4)

    # sanity vs. full-f32 PyTorch semantics (only bf16-matmul drift expected)
    y_f, loss_f = _reference_forward_f32(x, raw_params, targets, ones)
    assert jnp.allclose(y, y_f, atol=5e-3, rtol=5e-2)
    assert jnp.allclose(loss, loss_f, atol=5e-3, rtol=5e-2)

    # no-targets path: PyTorch returns un-squeezed (B, 1) and loss=None
    y2, loss2 = ffmodel_forward(x, prepared)
    jax.block_until_ready(y2)
    assert y2.shape == (B, 1) and loss2 is None

    print("KERNEL_OK")
</pallas_src>

<mosaic_0001>
module attributes {stable_mosaic.version = 11 : i64} {
  func.func @ffmodel_kernel(%arg0: i32, %arg1: memref<8x128xbf16, #tpu.memory_space<vmem>>, %arg2: memref<128x128xbf16, #tpu.memory_space<vmem>>, %arg3: memref<1x128xf32, #tpu.memory_space<vmem>>, %arg4: memref<128x128xbf16, #tpu.memory_space<vmem>>, %arg5: memref<1x128xf32, #tpu.memory_space<vmem>>, %arg6: memref<128x128xbf16, #tpu.memory_space<vmem>>, %arg7: memref<1x128xf32, #tpu.memory_space<vmem>>, %arg8: memref<128x1xf32, #tpu.memory_space<vmem>>, %arg9: memref<1x1xf32, #tpu.memory_space<smem>>, %arg10: memref<8x1xf32, #tpu.memory_space<vmem>>, %arg11: memref<8x1xf32, #tpu.memory_space<vmem>>, %arg12: memref<8x1xf32, #tpu.memory_space<vmem>>, %arg13: memref<8x1xf32, #tpu.memory_space<vmem>>) attributes {dimension_semantics = [#tpu.dimension_semantics<parallel>], iteration_bounds = array<i64: 1>, scalar_prefetch = 0 : i64, scratch_operands = 0 : i64, tpu.core_type = #tpu.core_type<tc>, window_params = [{transform_indices = @transform_0, window_bounds = array<i64: 8, 128>}, {pipeline_mode = #tpu.pipeline_mode<synchronous>, transform_indices = @transform_1, window_bounds = array<i64: 128, 128>}, {pipeline_mode = #tpu.pipeline_mode<synchronous>, transform_indices = @transform_2, window_bounds = array<i64: 1, 128>}, {pipeline_mode = #tpu.pipeline_mode<synchronous>, transform_indices = @transform_3, window_bounds = array<i64: 128, 128>}, {pipeline_mode = #tpu.pipeline_mode<synchronous>, transform_indices = @transform_4, window_bounds = array<i64: 1, 128>}, {pipeline_mode = #tpu.pipeline_mode<synchronous>, transform_indices = @transform_5, window_bounds = array<i64: 128, 128>}, {pipeline_mode = #tpu.pipeline_mode<synchronous>, transform_indices = @transform_6, window_bounds = array<i64: 1, 128>}, {pipeline_mode = #tpu.pipeline_mode<synchronous>, transform_indices = @transform_7, window_bounds = array<i64: 128, 1>}, {transform_indices = @transform_8, window_bounds = array<i64: 1, 1>}, {transform_indices = @transform_9, window_bounds = array<i64: 8, 1>}, {transform_indices = @transform_10, window_bounds = array<i64: 8, 1>}, {transform_indices = @transform_11, window_bounds = array<i64: 8, 1>}, {transform_indices = @transform_12, window_bounds = array<i64: 8, 1>}]} {
    %c0 = arith.constant 0 : index
    %c0_0 = arith.constant 0 : index
    %0 = vector.load %arg1[%c0, %c0_0] : memref<8x128xbf16, #tpu.memory_space<vmem>>, vector<8x128xbf16>
    %c0_1 = arith.constant 0 : index
    %c0_2 = arith.constant 0 : index
    %1 = vector.load %arg2[%c0_1, %c0_2] : memref<128x128xbf16, #tpu.memory_space<vmem>>, vector<128x128xbf16>
    %cst = arith.constant dense<0.000000e+00> : vector<8x128xf32>
    %2 = tpu.matmul %0, %1, %cst {dimension_numbers = #tpu.dot_dimension_numbers<[1], [0], [0], [1], [0, 0, 1, 1], [], []>} : vector<8x128xbf16>, vector<128x128xbf16>, vector<8x128xf32> -> vector<8x128xf32>
    %c0_3 = arith.constant 0 : index
    %c0_4 = arith.constant 0 : index
    %3 = vector.load %arg3[%c0_3, %c0_4] : memref<1x128xf32, #tpu.memory_space<vmem>>, vector<1x128xf32>
    %4 = vector.broadcast %3 : vector<1x128xf32> to vector<8x128xf32>
    %5 = arith.addf %2, %4 : vector<8x128xf32>
    %cst_5 = arith.constant 5.000000e-01 : f32
    %6 = vector.broadcast %cst_5 : f32 to vector<8x128xf32>
    %7 = arith.mulf %6, %5 : vector<8x128xf32>
    %cst_6 = arith.constant 4.471500e-02 : f32
    %8 = vector.broadcast %cst_6 : f32 to vector<8x128xf32>
    %9 = arith.mulf %8, %5 : vector<8x128xf32>
    %10 = arith.mulf %9, %5 : vector<8x128xf32>
    %11 = arith.mulf %10, %5 : vector<8x128xf32>
    %12 = arith.addf %5, %11 : vector<8x128xf32>
    %cst_7 = arith.constant 0.797884583 : f32
    %13 = vector.broadcast %cst_7 : f32 to vector<8x128xf32>
    %14 = arith.mulf %13, %12 : vector<8x128xf32>
    %15 = math.tanh %14 : vector<8x128xf32>
    %cst_8 = arith.constant 1.000000e+00 : f32
    %16 = vector.broadcast %cst_8 : f32 to vector<8x128xf32>
    %17 = arith.addf %16, %15 : vector<8x128xf32>
    %18 = arith.mulf %7, %17 : vector<8x128xf32>
    %19 = arith.truncf %18 : vector<8x128xf32> to vector<8x128xbf16>
    %c0_9 = arith.constant 0 : index
    %c0_10 = arith.constant 0 : index
    %20 = vector.load %arg4[%c0_9, %c0_10] : memref<128x128xbf16, #tpu.memory_space<vmem>>, vector<128x128xbf16>
    %cst_11 = arith.constant dense<0.000000e+00> : vector<8x128xf32>
    %21 = tpu.matmul %19, %20, %cst_11 {dimension_numbers = #tpu.dot_dimension_numbers<[1], [0], [0], [1], [0, 0, 1, 1], [], []>} : vector<8x128xbf16>, vector<128x128xbf16>, vector<8x128xf32> -> vector<8x128xf32>
    %c0_12 = arith.constant 0 : index
    %c0_13 = arith.constant 0 : index
    %22 = vector.load %arg5[%c0_12, %c0_13] : memref<1x128xf32, #tpu.memory_space<vmem>>, vector<1x128xf32>
    %23 = vector.broadcast %22 : vector<1x128xf32> to vector<8x128xf32>
    %24 = arith.addf %21, %23 : vector<8x128xf32>
    %cst_14 = arith.constant 5.000000e-01 : f32
    %25 = vector.broadcast %cst_14 : f32 to vector<8x128xf32>
    %26 = arith.mulf %25, %24 : vector<8x128xf32>
    %cst_15 = arith.constant 4.471500e-02 : f32
    %27 = vector.broadcast %cst_15 : f32 to vector<8x128xf32>
    %28 = arith.mulf %27, %24 : vector<8x128xf32>
    %29 = arith.mulf %28, %24 : vector<8x128xf32>
    %30 = arith.mulf %29, %24 : vector<8x128xf32>
    %31 = arith.addf %24, %30 : vector<8x128xf32>
    %cst_16 = arith.constant 0.797884583 : f32
    %32 = vector.broadcast %cst_16 : f32 to vector<8x128xf32>
    %33 = arith.mulf %32, %31 : vector<8x128xf32>
    %34 = math.tanh %33 : vector<8x128xf32>
    %cst_17 = arith.constant 1.000000e+00 : f32
    %35 = vector.broadcast %cst_17 : f32 to vector<8x128xf32>
    %36 = arith.addf %35, %34 : vector<8x128xf32>
    %37 = arith.mulf %26, %36 : vector<8x128xf32>
    %38 = arith.truncf %37 : vector<8x128xf32> to vector<8x128xbf16>
    %c0_18 = arith.constant 0 : index
    %c0_19 = arith.constant 0 : index
    %39 = vector.load %arg6[%c0_18, %c0_19] : memref<128x128xbf16, #tpu.memory_space<vmem>>, vector<128x128xbf16>
    %cst_20 = arith.constant dense<0.000000e+00> : vector<8x128xf32>
    %40 = tpu.matmul %38, %39, %cst_20 {dimension_numbers = #tpu.dot_dimension_numbers<[1], [0], [0], [1], [0, 0, 1, 1], [], []>} : vector<8x128xbf16>, vector<128x128xbf16>, vector<8x128xf32> -> vector<8x128xf32>
    %c0_21 = arith.constant 0 : index
    %c0_22 = arith.constant 0 : index
    %41 = vector.load %arg7[%c0_21, %c0_22] : memref<1x128xf32, #tpu.memory_space<vmem>>, vector<1x128xf32>
    %42 = vector.broadcast %41 : vector<1x128xf32> to vector<8x128xf32>
    %43 = arith.addf %40, %42 : vector<8x128xf32>
    %cst_23 = arith.constant 5.000000e-01 : f32
    %44 = vector.broadcast %cst_23 : f32 to vector<8x128xf32>
    %45 = arith.mulf %44, %43 : vector<8x128xf32>
    %cst_24 = arith.constant 4.471500e-02 : f32
    %46 = vector.broadcast %cst_24 : f32 to vector<8x128xf32>
    %47 = arith.mulf %46, %43 : vector<8x128xf32>
    %48 = arith.mulf %47, %43 : vector<8x128xf32>
    %49 = arith.mulf %48, %43 : vector<8x128xf32>
    %50 = arith.addf %43, %49 : vector<8x128xf32>
    %cst_25 = arith.constant 0.797884583 : f32
    %51 = vector.broadcast %cst_25 : f32 to vector<8x128xf32>
    %52 = arith.mulf %51, %50 : vector<8x128xf32>
    %53 = math.tanh %52 : vector<8x128xf32>
    %cst_26 = arith.constant 1.000000e+00 : f32
    %54 = vector.broadcast %cst_26 : f32 to vector<8x128xf32>
    %55 = arith.addf %54, %53 : vector<8x128xf32>
    %56 = arith.mulf %45, %55 : vector<8x128xf32>
    %c0_27 = arith.constant 0 : index
    %c0_28 = arith.constant 0 : index
    %57 = vector.load %arg8[%c0_27, %c0_28] : memref<128x1xf32, #tpu.memory_space<vmem>>, vector<128x1xf32>
    %cst_29 = arith.constant dense<0.000000e+00> : vector<8x1xf32>
    %58 = tpu.matmul %56, %57, %cst_29 {dimension_numbers = #tpu.dot_dimension_numbers<[1], [0], [0], [1], [0, 0, 1, 1], [], []>} : vector<8x128xf32>, vector<128x1xf32>, vector<8x1xf32> -> vector<8x1xf32>
    %c0_30 = arith.constant 0 : index
    %c0_31 = arith.constant 0 : index
    %59 = memref.load %arg9[%c0_30, %c0_31] : memref<1x1xf32, #tpu.memory_space<smem>>
    %60 = vector.broadcast %59 : f32 to vector<8x1xf32>
    %61 = arith.addf %58, %60 : vector<8x1xf32>
    %c0_32 = arith.constant 0 : index
    %c0_33 = arith.constant 0 : index
    %62 = vector.load %arg12[%c0_32, %c0_33] : memref<8x1xf32, #tpu.memory_space<vmem>>, vector<8x1xf32>
    tpu.vector_store %arg12[%c0_32, %c0_33], %61 {strides = array<i32>} : memref<8x1xf32, #tpu.memory_space<vmem>>, vector<8x1xf32>,
    %c0_34 = arith.constant 0 : index
    %c0_35 = arith.constant 0 : index
    %63 = vector.load %arg10[%c0_34, %c0_35] : memref<8x1xf32, #tpu.memory_space<vmem>>, vector<8x1xf32>
    %64 = arith.subf %61, %63 : vector<8x1xf32>
    %c0_36 = arith.constant 0 : index
    %c0_37 = arith.constant 0 : index
    %65 = vector.load %arg11[%c0_36, %c0_37] : memref<8x1xf32, #tpu.memory_space<vmem>>, vector<8x1xf32>
    %66 = arith.mulf %65, %64 : vector<8x1xf32>
    %67 = arith.mulf %66, %64 : vector<8x1xf32>
    %c0_38 = arith.constant 0 : index
    %c0_39 = arith.constant 0 : index
    %68 = vector.load %arg13[%c0_38, %c0_39] : memref<8x1xf32, #tpu.memory_space<vmem>>, vector<8x1xf32>
    tpu.vector_store %arg13[%c0_38, %c0_39], %67 {strides = array<i32>} : memref<8x1xf32, #tpu.memory_space<vmem>>, vector<8x1xf32>,
    return
  }
  func.func @transform_0(%arg0: i32) -> (i32, i32) {
    %c0_i32 = arith.constant 0 : i32
    %c0_i32_0 = arith.constant 0 : i32
    return %arg0, %c0_i32 : i32, i32
  }
  func.func @transform_1(%arg0: i32) -> (i32, i32) {
    %c0_i32 = arith.constant 0 : i32
    %c0_i32_0 = arith.constant 0 : i32
    %c0_i32_1 = arith.constant 0 : i32
    return %c0_i32, %c0_i32_0 : i32, i32
  }
  func.func @transform_2(%arg0: i32) -> (i32, i32) {
    %c0_i32 = arith.constant 0 : i32
    %c0_i32_0 = arith.constant 0 : i32
    %c0_i32_1 = arith.constant 0 : i32
    return %c0_i32, %c0_i32_0 : i32, i32
  }
  func.func @transform_3(%arg0: i32) -> (i32, i32) {
    %c0_i32 = arith.constant 0 : i32
    %c0_i32_0 = arith.constant 0 : i32
    %c0_i32_1 = arith.constant 0 : i32
    return %c0_i32, %c0_i32_0 : i32, i32
  }
  func.func @transform_4(%arg0: i32) -> (i32, i32) {
    %c0_i32 = arith.constant 0 : i32
    %c0_i32_0 = arith.constant 0 : i32
    %c0_i32_1 = arith.constant 0 : i32
    return %c0_i32, %c0_i32_0 : i32, i32
  }
  func.func @transform_5(%arg0: i32) -> (i32, i32) {
    %c0_i32 = arith.constant 0 : i32
    %c0_i32_0 = arith.constant 0 : i32
    %c0_i32_1 = arith.constant 0 : i32
    return %c0_i32, %c0_i32_0 : i32, i32
  }
  func.func @transform_6(%arg0: i32) -> (i32, i32) {
    %c0_i32 = arith.constant 0 : i32
    %c0_i32_0 = arith.constant 0 : i32
    %c0_i32_1 = arith.constant 0 : i32
    return %c0_i32, %c0_i32_0 : i32, i32
  }
  func.func @transform_7(%arg0: i32) -> (i32, i32) {
    %c0_i32 = arith.constant 0 : i32
    %c0_i32_0 = arith.constant 0 : i32
    %c0_i32_1 = arith.constant 0 : i32
    return %c0_i32, %c0_i32_0 : i32, i32
  }
  func.func @transform_8(%arg0: i32) -> (i32, i32) {
    %c0_i32 = arith.constant 0 : i32
    %c0_i32_0 = arith.constant 0 : i32
    %c0_i32_1 = arith.constant 0 : i32
    return %c0_i32, %c0_i32_0 : i32, i32
  }
  func.func @transform_9(%arg0: i32) -> (i32, i32) {
    %c0_i32 = arith.constant 0 : i32
    %c0_i32_0 = arith.constant 0 : i32
    return %arg0, %c0_i32 : i32, i32
  }
  func.func @transform_10(%arg0: i32) -> (i32, i32) {
    %c0_i32 = arith.constant 0 : i32
    %c0_i32_0 = arith.constant 0 : i32
    return %arg0, %c0_i32 : i32, i32
  }
  func.func @transform_11(%arg0: i32) -> (i32, i32) {
    %c0_i32 = arith.constant 0 : i32
    %c0_i32_0 = arith.constant 0 : i32
    return %arg0, %c0_i32 : i32, i32
  }
  func.func @transform_12(%arg0: i32) -> (i32, i32) {
    %c0_i32 = arith.constant 0 : i32
    %c0_i32_0 = arith.constant 0 : i32
    return %arg0, %c0_i32 : i32, i32
  }
}

module attributes {stable_mosaic.version = 11 : i64} {
  func.func @ffmodel_kernel(%arg0: i32, %arg1: memref<8x128xbf16, #tpu.memory_space<vmem>>, %arg2: memref<128x128xbf16, #tpu.memory_space<vmem>>, %arg3: memref<1x128xf32, #tpu.memory_space<vmem>>, %arg4: memref<128x128xbf16, #tpu.memory_space<vmem>>, %arg5: memref<1x128xf32, #tpu.memory_space<vmem>>, %arg6: memref<128x128xbf16, #tpu.memory_space<vmem>>, %arg7: memref<1x128xf32, #tpu.memory_space<vmem>>, %arg8: memref<128x1xf32, #tpu.memory_space<vmem>>, %arg9: memref<1x1xf32, #tpu.memory_space<smem>>, %arg10: memref<8x1xf32, #tpu.memory_space<vmem>>, %arg11: memref<8x1xf32, #tpu.memory_space<vmem>>, %arg12: memref<8x1xf32, #tpu.memory_space<vmem>>, %arg13: memref<8x1xf32, #tpu.memory_space<vmem>>) attributes {dimension_semantics = [#tpu.dimension_semantics<parallel>], iteration_bounds = array<i64: 1>, scalar_prefetch = 0 : i64, scratch_operands = 0 : i64, tpu.core_type = #tpu.core_type<tc>, window_params = [{transform_indices = @transform_0, window_bounds = array<i64: 8, 128>}, {pipeline_mode = #tpu.pipeline_mode<synchronous>, transform_indices = @transform_1, window_bounds = array<i64: 128, 128>}, {pipeline_mode = #tpu.pipeline_mode<synchronous>, transform_indices = @transform_2, window_bounds = array<i64: 1, 128>}, {pipeline_mode = #tpu.pipeline_mode<synchronous>, transform_indices = @transform_3, window_bounds = array<i64: 128, 128>}, {pipeline_mode = #tpu.pipeline_mode<synchronous>, transform_indices = @transform_4, window_bounds = array<i64: 1, 128>}, {pipeline_mode = #tpu.pipeline_mode<synchronous>, transform_indices = @transform_5, window_bounds = array<i64: 128, 128>}, {pipeline_mode = #tpu.pipeline_mode<synchronous>, transform_indices = @transform_6, window_bounds = array<i64: 1, 128>}, {pipeline_mode = #tpu.pipeline_mode<synchronous>, transform_indices = @transform_7, window_bounds = array<i64: 128, 1>}, {transform_indices = @transform_8, window_bounds = array<i64: 1, 1>}, {transform_indices = @transform_9, window_bounds = array<i64: 8, 1>}, {transform_indices = @transform_10, window_bounds = array<i64: 8, 1>}, {transform_indices = @transform_11, window_bounds = array<i64: 8, 1>}, {transform_indices = @transform_12, window_bounds = array<i64: 8, 1>}]} {
    %c0 = arith.constant 0 : index
    %c0_0 = arith.constant 0 : index
    %0 = vector.load %arg1[%c0, %c0_0] : memref<8x128xbf16, #tpu.memory_space<vmem>>, vector<8x128xbf16>
    %c0_1 = arith.constant 0 : index
    %c0_2 = arith.constant 0 : index
    %1 = vector.load %arg2[%c0_1, %c0_2] : memref<128x128xbf16, #tpu.memory_space<vmem>>, vector<128x128xbf16>
    %cst = arith.constant dense<0.000000e+00> : vector<8x128xf32>
    %2 = tpu.matmul %0, %1, %cst {dimension_numbers = #tpu.dot_dimension_numbers<[1], [0], [0], [1], [0, 0, 1, 1], [], []>} : vector<8x128xbf16>, vector<128x128xbf16>, vector<8x128xf32> -> vector<8x128xf32>
    %c0_3 = arith.constant 0 : index
    %c0_4 = arith.constant 0 : index
    %3 = vector.load %arg3[%c0_3, %c0_4] : memref<1x128xf32, #tpu.memory_space<vmem>>, vector<1x128xf32>
    %4 = vector.broadcast %3 : vector<1x128xf32> to vector<8x128xf32>
    %5 = arith.addf %2, %4 : vector<8x128xf32>
    %cst_5 = arith.constant 5.000000e-01 : f32
    %6 = vector.broadcast %cst_5 : f32 to vector<8x128xf32>
    %7 = arith.mulf %6, %5 : vector<8x128xf32>
    %cst_6 = arith.constant 4.471500e-02 : f32
    %8 = vector.broadcast %cst_6 : f32 to vector<8x128xf32>
    %9 = arith.mulf %8, %5 : vector<8x128xf32>
    %10 = arith.mulf %9, %5 : vector<8x128xf32>
    %11 = arith.mulf %10, %5 : vector<8x128xf32>
    %12 = arith.addf %5, %11 : vector<8x128xf32>
    %cst_7 = arith.constant 0.797884583 : f32
    %13 = vector.broadcast %cst_7 : f32 to vector<8x128xf32>
    %14 = arith.mulf %13, %12 : vector<8x128xf32>
    %15 = math.tanh %14 : vector<8x128xf32>
    %cst_8 = arith.constant 1.000000e+00 : f32
    %16 = vector.broadcast %cst_8 : f32 to vector<8x128xf32>
    %17 = arith.addf %16, %15 : vector<8x128xf32>
    %18 = arith.mulf %7, %17 : vector<8x128xf32>
    %19 = arith.truncf %18 : vector<8x128xf32> to vector<8x128xbf16>
    %c0_9 = arith.constant 0 : index
    %c0_10 = arith.constant 0 : index
    %20 = vector.load %arg4[%c0_9, %c0_10] : memref<128x128xbf16, #tpu.memory_space<vmem>>, vector<128x128xbf16>
    %cst_11 = arith.constant dense<0.000000e+00> : vector<8x128xf32>
    %21 = tpu.matmul %19, %20, %cst_11 {dimension_numbers = #tpu.dot_dimension_numbers<[1], [0], [0], [1], [0, 0, 1, 1], [], []>} : vector<8x128xbf16>, vector<128x128xbf16>, vector<8x128xf32> -> vector<8x128xf32>
    %c0_12 = arith.constant 0 : index
    %c0_13 = arith.constant 0 : index
    %22 = vector.load %arg5[%c0_12, %c0_13] : memref<1x128xf32, #tpu.memory_space<vmem>>, vector<1x128xf32>
    %23 = vector.broadcast %22 : vector<1x128xf32> to vector<8x128xf32>
    %24 = arith.addf %21, %23 : vector<8x128xf32>
    %cst_14 = arith.constant 5.000000e-01 : f32
    %25 = vector.broadcast %cst_14 : f32 to vector<8x128xf32>
    %26 = arith.mulf %25, %24 : vector<8x128xf32>
    %cst_15 = arith.constant 4.471500e-02 : f32
    %27 = vector.broadcast %cst_15 : f32 to vector<8x128xf32>
    %28 = arith.mulf %27, %24 : vector<8x128xf32>
    %29 = arith.mulf %28, %24 : vector<8x128xf32>
    %30 = arith.mulf %29, %24 : vector<8x128xf32>
    %31 = arith.addf %24, %30 : vector<8x128xf32>
    %cst_16 = arith.constant 0.797884583 : f32
    %32 = vector.broadcast %cst_16 : f32 to vector<8x128xf32>
    %33 = arith.mulf %32, %31 : vector<8x128xf32>
    %34 = math.tanh %33 : vector<8x128xf32>
    %cst_17 = arith.constant 1.000000e+00 : f32
    %35 = vector.broadcast %cst_17 : f32 to vector<8x128xf32>
    %36 = arith.addf %35, %34 : vector<8x128xf32>
    %37 = arith.mulf %26, %36 : vector<8x128xf32>
    %38 = arith.truncf %37 : vector<8x128xf32> to vector<8x128xbf16>
    %c0_18 = arith.constant 0 : index
    %c0_19 = arith.constant 0 : index
    %39 = vector.load %arg6[%c0_18, %c0_19] : memref<128x128xbf16, #tpu.memory_space<vmem>>, vector<128x128xbf16>
    %cst_20 = arith.constant dense<0.000000e+00> : vector<8x128xf32>
    %40 = tpu.matmul %38, %39, %cst_20 {dimension_numbers = #tpu.dot_dimension_numbers<[1], [0], [0], [1], [0, 0, 1, 1], [], []>} : vector<8x128xbf16>, vector<128x128xbf16>, vector<8x128xf32> -> vector<8x128xf32>
    %c0_21 = arith.constant 0 : index
    %c0_22 = arith.constant 0 : index
    %41 = vector.load %arg7[%c0_21, %c0_22] : memref<1x128xf32, #tpu.memory_space<vmem>>, vector<1x128xf32>
    %42 = vector.broadcast %41 : vector<1x128xf32> to vector<8x128xf32>
    %43 = arith.addf %40, %42 : vector<8x128xf32>
    %cst_23 = arith.constant 5.000000e-01 : f32
    %44 = vector.broadcast %cst_23 : f32 to vector<8x128xf32>
    %45 = arith.mulf %44, %43 : vector<8x128xf32>
    %cst_24 = arith.constant 4.471500e-02 : f32
    %46 = vector.broadcast %cst_24 : f32 to vector<8x128xf32>
    %47 = arith.mulf %46, %43 : vector<8x128xf32>
    %48 = arith.mulf %47, %43 : vector<8x128xf32>
    %49 = arith.mulf %48, %43 : vector<8x128xf32>
    %50 = arith.addf %43, %49 : vector<8x128xf32>
    %cst_25 = arith.constant 0.797884583 : f32
    %51 = vector.broadcast %cst_25 : f32 to vector<8x128xf32>
    %52 = arith.mulf %51, %50 : vector<8x128xf32>
    %53 = math.tanh %52 : vector<8x128xf32>
    %cst_26 = arith.constant 1.000000e+00 : f32
    %54 = vector.broadcast %cst_26 : f32 to vector<8x128xf32>
    %55 = arith.addf %54, %53 : vector<8x128xf32>
    %56 = arith.mulf %45, %55 : vector<8x128xf32>
    %c0_27 = arith.constant 0 : index
    %c0_28 = arith.constant 0 : index
    %57 = vector.load %arg8[%c0_27, %c0_28] : memref<128x1xf32, #tpu.memory_space<vmem>>, vector<128x1xf32>
    %cst_29 = arith.constant dense<0.000000e+00> : vector<8x1xf32>
    %58 = tpu.matmul %56, %57, %cst_29 {dimension_numbers = #tpu.dot_dimension_numbers<[1], [0], [0], [1], [0, 0, 1, 1], [], []>} : vector<8x128xf32>, vector<128x1xf32>, vector<8x1xf32> -> vector<8x1xf32>
    %c0_30 = arith.constant 0 : index
    %c0_31 = arith.constant 0 : index
    %59 = memref.load %arg9[%c0_30, %c0_31] : memref<1x1xf32, #tpu.memory_space<smem>>
    %60 = vector.broadcast %59 : f32 to vector<8x1xf32>
    %61 = arith.addf %58, %60 : vector<8x1xf32>
    %c0_32 = arith.constant 0 : index
    %c0_33 = arith.constant 0 : index
    %62 = vector.load %arg12[%c0_32, %c0_33] : memref<8x1xf32, #tpu.memory_space<vmem>>, vector<8x1xf32>
    tpu.vector_store %arg12[%c0_32, %c0_33], %61 {strides = array<i32>} : memref<8x1xf32, #tpu.memory_space<vmem>>, vector<8x1xf32>,
    %c0_34 = arith.constant 0 : index
    %c0_35 = arith.constant 0 : index
    %63 = vector.load %arg10[%c0_34, %c0_35] : memref<8x1xf32, #tpu.memory_space<vmem>>, vector<8x1xf32>
    %64 = arith.subf %61, %63 : vector<8x1xf32>
    %c0_36 = arith.constant 0 : index
    %c0_37 = arith.constant 0 : index
    %65 = vector.load %arg11[%c0_36, %c0_37] : memref<8x1xf32, #tpu.memory_space<vmem>>, vector<8x1xf32>
    %66 = arith.mulf %65, %64 : vector<8x1xf32>
    %67 = arith.mulf %66, %64 : vector<8x1xf32>
    %c0_38 = arith.constant 0 : index
    %c0_39 = arith.constant 0 : index
    %68 = vector.load %arg13[%c0_38, %c0_39] : memref<8x1xf32, #tpu.memory_space<vmem>>, vector<8x1xf32>
    tpu.vector_store %arg13[%c0_38, %c0_39], %67 {strides = array<i32>} : memref<8x1xf32, #tpu.memory_space<vmem>>, vector<8x1xf32>,
    return
  }
  func.func @transform_0(%arg0: i32) -> (i32, i32) {
    %c0_i32 = arith.constant 0 : i32
    %c0_i32_0 = arith.constant 0 : i32
    return %arg0, %c0_i32 : i32, i32
  }
  func.func @transform_1(%arg0: i32) -> (i32, i32) {
    %c0_i32 = arith.constant 0 : i32
    %c0_i32_0 = arith.constant 0 : i32
    %c0_i32_1 = arith.constant 0 : i32
    return %c0_i32, %c0_i32_0 : i32, i32
  }
  func.func @transform_2(%arg0: i32) -> (i32, i32) {
    %c0_i32 = arith.constant 0 : i32
    %c0_i32_0 = arith.constant 0 : i32
    %c0_i32_1 = arith.constant 0 : i32
    return %c0_i32, %c0_i32_0 : i32, i32
  }
  func.func @transform_3(%arg0: i32) -> (i32, i32) {
    %c0_i32 = arith.constant 0 : i32
    %c0_i32_0 = arith.constant 0 : i32
    %c0_i32_1 = arith.constant 0 : i32
    return %c0_i32, %c0_i32_0 : i32, i32
  }
  func.func @transform_4(%arg0: i32) -> (i32, i32) {
    %c0_i32 = arith.constant 0 : i32
    %c0_i32_0 = arith.constant 0 : i32
    %c0_i32_1 = arith.constant 0 : i32
    return %c0_i32, %c0_i32_0 : i32, i32
  }
  func.func @transform_5(%arg0: i32) -> (i32, i32) {
    %c0_i32 = arith.constant 0 : i32
    %c0_i32_0 = arith.constant 0 : i32
    %c0_i32_1 = arith.constant 0 : i32
    return %c0_i32, %c0_i32_0 : i32, i32
  }
  func.func @transform_6(%arg0: i32) -> (i32, i32) {
    %c0_i32 = arith.constant 0 : i32
    %c0_i32_0 = arith.constant 0 : i32
    %c0_i32_1 = arith.constant 0 : i32
    return %c0_i32, %c0_i32_0 : i32, i32
  }
  func.func @transform_7(%arg0: i32) -> (i32, i32) {
    %c0_i32 = arith.constant 0 : i32
    %c0_i32_0 = arith.constant 0 : i32
    %c0_i32_1 = arith.constant 0 : i32
    return %c0_i32, %c0_i32_0 : i32, i32
  }
  func.func @transform_8(%arg0: i32) -> (i32, i32) {
    %c0_i32 = arith.constant 0 : i32
    %c0_i32_0 = arith.constant 0 : i32
    %c0_i32_1 = arith.constant 0 : i32
    return %c0_i32, %c0_i32_0 : i32, i32
  }
  func.func @transform_9(%arg0: i32) -> (i32, i32) {
    %c0_i32 = arith.constant 0 : i32
    %c0_i32_0 = arith.constant 0 : i32
    return %arg0, %c0_i32 : i32, i32
  }
  func.func @transform_10(%arg0: i32) -> (i32, i32) {
    %c0_i32 = arith.constant 0 : i32
    %c0_i32_0 = arith.constant 0 : i32
    return %arg0, %c0_i32 : i32, i32
  }
  func.func @transform_11(%arg0: i32) -> (i32, i32) {
    %c0_i32 = arith.constant 0 : i32
    %c0_i32_0 = arith.constant 0 : i32
    return %arg0, %c0_i32 : i32, i32
  }
  func.func @transform_12(%arg0: i32) -> (i32, i32) {
    %c0_i32 = arith.constant 0 : i32
    %c0_i32_0 = arith.constant 0 : i32
    return %arg0, %c0_i32 : i32, i32
  }
}

</mosaic_0001>

<bundles_post_ra>
// kernel: _ffmodel_forward_impl.1
= control target key start
LH: loop header
LB: loop body
LE: loop exit
PB: predicated region body
PF: predicated region fallthrough
CT: control target
= control target key end

     0   :  { %19 = vsyncpa [#allocation4], 0  ;;  %s770_s21 = smov [#allocation3]   ;;  %s1027_s0 = inlined_call_operand.vmem [shape: bf16[8,128], index: 0, kind: input, shape index: {}]   ;;  %s1028_s1 = inlined_call_operand.vmem [shape: bf16[128,128], index: 1, kind: input, shape index: {}]   ;;  %s1029_s2 = inlined_call_operand.vmem [shape: f32[1,128], index: 2, kind: input, shape index: {}]   ;;  %s1030_s3 = inlined_call_operand.vmem [shape: bf16[128,128], index: 3, kind: input, shape index: {}]   ;;  %s1031_s4 = inlined_call_operand.hbm [shape: f32[1,128], index: 4, kind: input, shape index: {}]   ;;  %s1032_s5 = inlined_call_operand.vmem [shape: bf16[128,128], index: 5, kind: input, shape index: {}]   ;;  %s1033_s6 = inlined_call_operand.vmem [shape: f32[1,128], index: 6, kind: input, shape index: {}]   ;;  %s1034_s7 = inlined_call_operand.vmem [shape: f32[128,1], index: 7, kind: input, shape index: {}]   ;;  %s1035_s8 = inlined_call_operand.<no memory space> [shape: f32[1,1], index: 8, kind: input, shape index: {}]   ;;  %s1036_s9 = inlined_call_operand.vmem [shape: f32[8,1], index: 9, kind: input, shape index: {}]   ;;  %s1037_s10 = inlined_call_operand.vmem [shape: f32[8,1], index: 10, kind: input, shape index: {}]   ;;  %s1038_s11 = inlined_call_operand.vmem [shape: f32[8,1], index: 11, kind: output, shape index: {0}]   ;;  %s1039_s12 = inlined_call_operand.vmem [shape: f32[8,1], index: 12, kind: output, shape index: {1}]  }
   0x1   :  { %s34_s22 = sshll.u32 %s770_s21, 4  ;;  %s746_s25 = scalar_lea.hbm %s1031_s4, 16  ;;  %s35_s22 = int_to_ptr.vmem [resolvable:$true] %s34_s22 }
   0x2   :  { %p747_p0 = scmp.ne.s32.totalorder %s1031_s4, %s746_s25  ;;  %p750_p1 = scmp.lt.u32.totalorder %s746_s25, %s1031_s4 }
   0x4   :  { %p752_p2 = pnand %p750_p1, %p747_p0 }
   0x6   :  { %755 = shalt.err (!%p752_p2)
}
   0x7   :  { %s756_s30 = scalar_lea.vmem %s35_s22, 16  ;;  %s760_s13 = scalar_lea.vmem %s35_s22, 32 }
   0x8   :  { %p757_p3 = scmp.ne.s32.totalorder %s35_s22, %s756_s30  ;;  %p761_p4 = scmp.lt.s32.totalorder %s35_s22, %s35_s22 }
   0x9   :  { %p762_p5 = scmp.lt.s32.totalorder %s760_s13, %s756_s30 }
   0xb   :  { %p763_p6 = por %p762_p5, %p761_p4 }
   0xd   :  { %p764_p7 = pnand %p763_p6, %p757_p3 }
   0xf   :  { %767 = shalt.err (!%p764_p7)
}
  0x10   :  { %37 = dma.hbm_to_vmem [thread:$0]  %s1031_s4, 16, %s35_s22, [#allocation4]  }
  0x11   :  { %768 = dma.done.wait [#allocation4], 16  }
  0x12   :  { %769 = vsyncadd [#allocation4], 4294967280  ;;  %v771_v0 = vmov 0.0   ;;  %vm772_vm0 = vmmov 0   ;;  %v716_v1 = vld [vmem:[%s1028_s1] sm:$0xff]   ;;  %v717_v2 = vld [vmem:[%s1028_s1 + $0x8] sm:$0xff]  }
  0x13   :  { %593 = vmatprep.subr.bf16.mxu0 %v771_v0  ;;  %609 = vmatprep.mubr.msk.bf16.mxu0 %vm772_vm0, %v771_v0  ;;  %v718_v3 = vld [vmem:[%s1028_s1 + $0x10] sm:$0xff]   ;;  %v719_v4 = vld [vmem:[%s1028_s1 + $0x18] sm:$0xff]   ;;  %v724_v5 = vld [vmem:[%s1030_s3] sm:$0xff]   ;;  %v773_v44 = vmov 0.0|0.0   ;;  %vm505_vm1 = vcmask 7168  }
  0x14   :  { %613 = vmatprep.subr.bf16.mxu1 %v771_v0  ;;  %629 = vmatprep.mubr.msk.bf16.mxu1 %vm772_vm0, %v771_v0  ;;  %v720_v6 = vld [vmem:[%s1028_s1 + $0x20] sm:$0xff]   ;;  %v721_v7 = vld [vmem:[%s1028_s1 + $0x28] sm:$0xff]   ;;  %v722_v8 = vld [vmem:[%s1028_s1 + $0x30] sm:$0xff]  }
  0x15   :  { %594 = vmatpush3.bf16.msra.mxu0 %v716_v1  ;;  %614 = vmatpush3.bf16.msra.mxu1 %v724_v5  ;;  %v723_v9 = vld [vmem:[%s1028_s1 + $0x38] sm:$0xff]   ;;  %v54_v10 = vld [vmem:[%s1027_s0] sm:$0xf]  ;;  %v725_v11 = vld [vmem:[%s1030_s3 + $0x8] sm:$0xff]  }
  0x16   :  { %595 = vmatprep.subr.bf16.mxu0 %v771_v0  ;;  %615 = vmatprep.subr.bf16.mxu1 %v771_v0  ;;  %v726_v12 = vld [vmem:[%s1030_s3 + $0x10] sm:$0xff]   ;;  %v727_v13 = vld [vmem:[%s1030_s3 + $0x18] sm:$0xff]   ;;  %v728_v14 = vld [vmem:[%s1030_s3 + $0x20] sm:$0xff]  }
  0x17   :  { %v729_v15 = vld [vmem:[%s1030_s3 + $0x28] sm:$0xff]   ;;  %v730_v16 = vld [vmem:[%s1030_s3 + $0x30] sm:$0xff]   ;;  %v731_v17 = vld [vmem:[%s1030_s3 + $0x38] sm:$0xff]  }
  0x18   :  { %v732_v18 = vld [vmem:[%s1032_s5] sm:$0xff]   ;;  %v733_v35 = vld [vmem:[%s1032_s5 + $0x8] sm:$0xff]   ;;  %v734_v36 = vld [vmem:[%s1032_s5 + $0x10] sm:$0xff]  }
  0x19   :  { %596 = vmatpush3.bf16.msra.mxu0 %v717_v2  ;;  %616 = vmatpush3.bf16.msra.mxu1 %v725_v11  ;;  %v522_v19 = vld [vmem:[%s1029_s2] ss:$0 sm:$0xff]  ;;  %v735_v37 = vld [vmem:[%s1032_s5 + $0x18] sm:$0xff]   ;;  %v737_v39 = vld [vmem:[%s1032_s5 + $0x28] sm:$0xff]  }
  0x1a   :  { %597 = vmatprep.subr.bf16.mxu0 %v771_v0  ;;  %617 = vmatprep.subr.bf16.mxu1 %v771_v0  ;;  %v736_v38 = vld [vmem:[%s1032_s5 + $0x20] sm:$0xff]   ;;  %v738_v40 = vld [vmem:[%s1032_s5 + $0x30] sm:$0xff]   ;;  %v739_v41 = vld [vmem:[%s1032_s5 + $0x38] sm:$0xff]  }
  0x1b   :  { %v417_v42 = vld [vmem:[%s1034_s7] sm:$0xff]  ;;  %v418_v43 = vld [vmem:[%s1034_s7 + $0x8] sm:$0xff]  ;;  %v419_v62 = vld [vmem:[%s1034_s7 + $0x10] sm:$0xff] }
  0x1c   :  { %v689_v45 = vpack.c.bf16 %v418_v43, %v417_v42  ;;  %v531_v46 = vld [vmem:[#allocation3] ss:$0 sm:$0xff]  ;;  %v420_v63 = vld [vmem:[%s1034_s7 + $0x18] sm:$0xff]  ;;  %v422_v2 = vld [vmem:[%s1034_s7 + $0x28] sm:$0xff] }
  0x1d   :  { %598 = vmatpush3.bf16.msra.mxu0 %v718_v3  ;;  %618 = vmatpush3.bf16.msra.mxu1 %v726_v12  ;;  %v421_v1 = vld [vmem:[%s1034_s7 + $0x20] sm:$0xff]  ;;  %v424_v5 = vld [vmem:[%s1034_s7 + $0x38] sm:$0xff] }
  0x1e   :  { %599 = vmatprep.subr.bf16.mxu0 %v771_v0  ;;  %619 = vmatprep.subr.bf16.mxu1 %v771_v0  ;;  %v695_v3 = vpack.c.bf16 %v422_v2, %v421_v1  ;;  %v428_v11 = vld [vmem:[%s1034_s7 + $0x58] sm:$0xff] }
  0x21   :  { %600 = vmatpush3.bf16.msra.mxu0 %v719_v4  ;;  %620 = vmatpush3.bf16.msra.mxu1 %v727_v13  ;;  %v423_v4 = vld [vmem:[%s1034_s7 + $0x30] sm:$0xff]  ;;  %v429_v13 = vld [vmem:[%s1034_s7 + $0x60] sm:$0xff] }
  0x22   :  { %601 = vmatprep.subr.bf16.mxu0 %v771_v0  ;;  %621 = vmatprep.subr.bf16.mxu1 %v771_v0 }
  0x25   :  { %602 = vmatpush3.bf16.msra.mxu0 %v720_v6  ;;  %622 = vmatpush3.bf16.msra.mxu1 %v728_v14  ;;  %v698_v6 = vpack.c.bf16 %v424_v5, %v423_v4  ;;  %v430_v14 = vld [vmem:[%s1034_s7 + $0x68] sm:$0xff] }
  0x26   :  { %603 = vmatprep.subr.bf16.mxu0 %v771_v0  ;;  %623 = vmatprep.subr.bf16.mxu1 %v771_v0 }
  0x29   :  { %604 = vmatpush3.bf16.msra.mxu0 %v721_v7  ;;  %624 = vmatpush3.bf16.msra.mxu1 %v729_v15  ;;  %v425_v7 = vld [vmem:[%s1034_s7 + $0x40] sm:$0xff]  ;;  %v707_v15 = vpack.c.bf16 %v430_v14, %v429_v13 }
  0x2a   :  { %605 = vmatprep.subr.bf16.mxu0 %v771_v0  ;;  %625 = vmatprep.subr.bf16.mxu1 %v771_v0 }
  0x2d   :  { %606 = vmatpush3.bf16.msra.mxu0 %v722_v8  ;;  %626 = vmatpush3.bf16.msra.mxu1 %v730_v16  ;;  %v426_v8 = vld [vmem:[%s1034_s7 + $0x48] sm:$0xff]  ;;  %v431_v16 = vld [vmem:[%s1034_s7 + $0x70] sm:$0xff] }
  0x2e   :  { %607 = vmatprep.subr.bf16.mxu0 %v771_v0  ;;  %627 = vmatprep.subr.bf16.mxu1 %v771_v0 }
  0x31   :  { %608 = vmatpush3.bf16.msra.mxu0 %v723_v9  ;;  %628 = vmatpush3.bf16.msra.mxu1 %v731_v17  ;;  %v701_v9 = vpack.c.bf16 %v426_v8, %v425_v7  ;;  %v432_v17 = vld [vmem:[%s1034_s7 + $0x78] sm:$0xff] }
  0x32   :  { %633 = vmatprep.subr.bf16.mxu0 %v771_v0  ;;  %688 = vmatprep.subr.bf16.mxu1 %v773_v44 }
  0x34   :  { %610 = vmatmul.mubr.bf16.vlgmr.msra.gmra.mrb[0].mxu0 %v54_v10  ;;  %v427_v10 = vld [vmem:[%s1034_s7 + $0x50] sm:$0xff] }
  0x35   :  { %649 = vmatprep.mubr.msk.bf16.mxu0 %vm772_vm0, %v771_v0  ;;  %634 = vmatpush3.bf16.msra.mxu0 %v732_v18  ;;  %v704_v12 = vpack.c.bf16 %v428_v11, %v427_v10  ;;  %v710_v18 = vpack.c.bf16 %v432_v17, %v431_v16 }
  0x36   :  { %635 = vmatprep.subr.bf16.mxu0 %v771_v0 }
  0x39   :  { %636 = vmatpush3.bf16.msra.mxu0 %v733_v35 }
  0x3a   :  { %637 = vmatprep.subr.bf16.mxu0 %v771_v0 }
  0x3d   :  { %638 = vmatpush3.bf16.msra.mxu0 %v734_v36  ;;  %v507_v36 = vld [vmem:[%s1036_s9] sm:$0xff] }
  0x3e   :  { %639 = vmatprep.subr.bf16.mxu0 %v771_v0 }
  0x41   :  { %640 = vmatpush3.bf16.msra.mxu0 %v735_v37 }
  0x42   :  { %641 = vmatprep.subr.bf16.mxu0 %v771_v0 }
  0x45   :  { %642 = vmatpush3.bf16.msra.mxu0 %v736_v38 }
  0x46   :  { %643 = vmatprep.subr.bf16.mxu0 %v771_v0 }
  0x49   :  { %644 = vmatpush3.bf16.msra.mxu0 %v737_v39  ;;  %v509_v39 = vld [vmem:[%s1037_s10] sm:$0xff] }
  0x4a   :  { %645 = vmatprep.subr.bf16.mxu0 %v771_v0 }
  0x4d   :  { %646 = vmatpush3.bf16.msra.mxu0 %v738_v40 }
  0x4e   :  { %647 = vmatprep.subr.bf16.mxu0 %v771_v0 }
  0x51   :  { %648 = vmatpush3.bf16.msra.mxu0 %v739_v41 }
 0x107   :  { %v160_v20 = vpop.f32.mrb[0].mxu0 }
 0x108   :  { %v161_v21 = vadd.f32 %v522_v19, %v160_v20  ;;  %v611_v22 = vpop.f32.mrb[1].mxu0  ;;  %v540_v19 = vld [vmem:[%s1033_s6] ss:$0 sm:$0xff] }
 0x109   :  { %v163_v23 = vpop.f32.mrb[2].mxu0 }
 0x10a   :  { %v167_v24 = vmul.f32 0.044715, %v161_v21  ;;  %v612_v25 = vpop.f32.mrb[3].mxu0  ;;  %v166_v31 = vmul.f32 0.5, %v161_v21 }
 0x10c   :  { %v168_v26 = vmul.f32 %v167_v24, %v161_v21 }
 0x10e   :  { %v169_v27 = vmul.f32 %v168_v26, %v161_v21 }
 0x110   :  { %v170_v28 = vadd.f32 %v169_v27, %v161_v21 }
 0x112   :  { %v171_v29 = vmul.f32 0.7978846, %v170_v28 }
 0x114   :  { %740 = vtanh.f32 %v171_v29 }
 0x11e   :  { %v741_v30 = vpop.eup %740 }
 0x11f   :  { %v173_v32 = vadd.f32 1.0, %v741_v30 }
 0x121   :  { %v174_v33 = vmul.f32 %v173_v32, %v166_v31 }
 0x123   :  { %v175_v34 = vpack.c.bf16 %v174_v33, %v174_v33 }
 0x125   :  { %630 = vmatmul.mubr.bf16.vlgmr.msra.gmra.mrb[0].mxu1 %v175_v34  ;;  %v434_v34 = vstv %s1035_s8 }
 0x126   :  { %685 = vmatprep.mubr.msk.f32.mxu1 %vm772_vm0, %v771_v0  ;;  %690 = vmatpush3.bf16.msra.mxu1 %v689_v45  ;;  %v692_v0 = vpack.c.bf16 %v420_v63, %v419_v62 }
 0x127   :  { %691 = vmatprep.subr.bf16.mxu1 %v773_v44 }
 0x12a   :  { %693 = vmatpush3.bf16.msra.mxu1 %v692_v0 }
 0x12b   :  { %694 = vmatprep.subr.bf16.mxu1 %v773_v44 }
 0x12e   :  { %696 = vmatpush3.bf16.msra.mxu1 %v695_v3 }
 0x12f   :  { %697 = vmatprep.subr.bf16.mxu1 %v773_v44 }
 0x132   :  { %699 = vmatpush3.bf16.msra.mxu1 %v698_v6 }
 0x133   :  { %700 = vmatprep.subr.bf16.mxu1 %v773_v44 }
 0x136   :  { %702 = vmatpush3.bf16.msra.mxu1 %v701_v9 }
 0x137   :  { %703 = vmatprep.subr.bf16.mxu1 %v773_v44 }
 0x13a   :  { %705 = vmatpush3.bf16.msra.mxu1 %v704_v12 }
 0x13b   :  { %706 = vmatprep.subr.bf16.mxu1 %v773_v44 }
 0x13e   :  { %708 = vmatpush3.bf16.msra.mxu1 %v707_v15 }
 0x13f   :  { %709 = vmatprep.subr.bf16.mxu1 %v773_v44 }
 0x142   :  { %711 = vmatpush3.bf16.msra.mxu1 %v710_v18 }
 0x1f8   :  { %v281_v47 = vpop.f32.mrb[0].mxu1 }
 0x1f9   :  { %v282_v48 = vadd.f32 %v531_v46, %v281_v47  ;;  %v631_v49 = vpop.f32.mrb[1].mxu1 }
 0x1fa   :  { %v284_v50 = vpop.f32.mrb[2].mxu1 }
 0x1fb   :  { %v288_v51 = vmul.f32 0.044715, %v282_v48  ;;  %v632_v52 = vpop.f32.mrb[3].mxu1  ;;  %v287_v58 = vmul.f32 0.5, %v282_v48 }
 0x1fd   :  { %v289_v53 = vmul.f32 %v288_v51, %v282_v48 }
 0x1ff   :  { %v290_v54 = vmul.f32 %v289_v53, %v282_v48 }
 0x201   :  { %v291_v55 = vadd.f32 %v290_v54, %v282_v48 }
 0x203   :  { %v292_v56 = vmul.f32 0.7978846, %v291_v55 }
 0x205   :  { %742 = vtanh.f32 %v292_v56 }
 0x20f   :  { %v743_v57 = vpop.eup %742 }
 0x210   :  { %v294_v59 = vadd.f32 1.0, %v743_v57 }
 0x212   :  { %v295_v60 = vmul.f32 %v294_v59, %v287_v58 }
 0x214   :  { %v296_v61 = vpack.c.bf16 %v295_v60, %v295_v60 }
 0x216   :  { %650 = vmatmul.mubr.bf16.vlgmr.msra.gmra.mrb[4].mxu0 %v296_v61 }
 0x2e9   :  { %v402_v20 = vpop.f32.mrb[4].mxu0 }
 0x2ea   :  { %v403_v21 = vadd.f32 %v540_v19, %v402_v20  ;;  %v651_v22 = vpop.f32.mrb[5].mxu0 }
 0x2eb   :  { %v405_v23 = vpop.f32.mrb[6].mxu0 }
 0x2ec   :  { %v409_v24 = vmul.f32 0.044715, %v403_v21  ;;  %v652_v25 = vpop.f32.mrb[7].mxu0  ;;  %v408_v31 = vmul.f32 0.5, %v403_v21 }
 0x2ee   :  { %v410_v26 = vmul.f32 %v409_v24, %v403_v21 }
 0x2f0   :  { %v411_v27 = vmul.f32 %v410_v26, %v403_v21 }
 0x2f2   :  { %v412_v28 = vadd.f32 %v411_v27, %v403_v21 }
 0x2f4   :  { %v413_v29 = vmul.f32 0.7978846, %v412_v28 }
 0x2f6   :  { %744 = vtanh.f32 %v413_v29 }
 0x300   :  { %v745_v30 = vpop.eup %744 }
 0x301   :  { %v415_v32 = vadd.f32 1.0, %v745_v30 }
 0x303   :  { %v416_v33 = vmul.f32 %v415_v32, %v408_v31 }
 0x305   :  { %686 = vmatmul.mubr.f32.vlgmr.msra.gmra.mrb[4].mxu1 %v416_v33 }
 0x3d8   :  { %v501_v35 = vpop.f32.mrb[4].mxu1 }
 0x3d9   :  { %v502_v37 = vadd.f32 %v501_v35, %v434_v34  ;;  %v687_v38 = vpop.f32.mrb[5].mxu1 }
 0x3db   :  { %506 = vst.msk [vmem:[%s1038_s11] sm:$0xff] %vm505_vm1, %v502_v37  ;;  %v508_v40 = vsub.f32 %v502_v37, %v507_v36 }
 0x3dd   :  { %v510_v41 = vmul.f32 %v509_v39, %v508_v40 }
 0x3df   :  { %v511_v42 = vmul.f32 %v510_v41, %v508_v40 }
 0x3e1   :  { %512 = vst.msk [vmem:[%s1039_s12] sm:$0xff] %vm505_vm1, %v511_v42 }
 0x3e2   :  { %521 = vsyncpa [#allocation4], 1 }

// kernel: _ffmodel_forward_impl.1
= control target key start
LH: loop header
LB: loop body
LE: loop exit
PB: predicated region body
PF: predicated region fallthrough
CT: control target
= control target key end

     0   :  { %19 = vsyncpa [#allocation4], 0  ;;  %s770_s21 = smov [#allocation3]   ;;  %s1027_s0 = inlined_call_operand.vmem [shape: bf16[8,128], index: 0, kind: input, shape index: {}]   ;;  %s1028_s1 = inlined_call_operand.vmem [shape: bf16[128,128], index: 1, kind: input, shape index: {}]   ;;  %s1029_s2 = inlined_call_operand.vmem [shape: f32[1,128], index: 2, kind: input, shape index: {}]   ;;  %s1030_s3 = inlined_call_operand.vmem [shape: bf16[128,128], index: 3, kind: input, shape index: {}]   ;;  %s1031_s4 = inlined_call_operand.hbm [shape: f32[1,128], index: 4, kind: input, shape index: {}]   ;;  %s1032_s5 = inlined_call_operand.vmem [shape: bf16[128,128], index: 5, kind: input, shape index: {}]   ;;  %s1033_s6 = inlined_call_operand.vmem [shape: f32[1,128], index: 6, kind: input, shape index: {}]   ;;  %s1034_s7 = inlined_call_operand.vmem [shape: f32[128,1], index: 7, kind: input, shape index: {}]   ;;  %s1035_s8 = inlined_call_operand.<no memory space> [shape: f32[1,1], index: 8, kind: input, shape index: {}]   ;;  %s1036_s9 = inlined_call_operand.vmem [shape: f32[8,1], index: 9, kind: input, shape index: {}]   ;;  %s1037_s10 = inlined_call_operand.vmem [shape: f32[8,1], index: 10, kind: input, shape index: {}]   ;;  %s1038_s11 = inlined_call_operand.vmem [shape: f32[8,1], index: 11, kind: output, shape index: {0}]   ;;  %s1039_s12 = inlined_call_operand.vmem [shape: f32[8,1], index: 12, kind: output, shape index: {1}]  }
   0x1   :  { %s34_s22 = sshll.u32 %s770_s21, 4  ;;  %s746_s25 = scalar_lea.hbm %s1031_s4, 16  ;;  %s35_s22 = int_to_ptr.vmem [resolvable:$true] %s34_s22 }
   0x2   :  { %p747_p0 = scmp.ne.s32.totalorder %s1031_s4, %s746_s25  ;;  %p750_p1 = scmp.lt.u32.totalorder %s746_s25, %s1031_s4 }
   0x4   :  { %p752_p2 = pnand %p750_p1, %p747_p0 }
   0x6   :  { %755 = shalt.err (!%p752_p2)
}
   0x7   :  { %s756_s30 = scalar_lea.vmem %s35_s22, 16  ;;  %s760_s13 = scalar_lea.vmem %s35_s22, 32 }
   0x8   :  { %p757_p3 = scmp.ne.s32.totalorder %s35_s22, %s756_s30  ;;  %p761_p4 = scmp.lt.s32.totalorder %s35_s22, %s35_s22 }
   0x9   :  { %p762_p5 = scmp.lt.s32.totalorder %s760_s13, %s756_s30 }
   0xb   :  { %p763_p6 = por %p762_p5, %p761_p4 }
   0xd   :  { %p764_p7 = pnand %p763_p6, %p757_p3 }
   0xf   :  { %767 = shalt.err (!%p764_p7)
}
  0x10   :  { %37 = dma.hbm_to_vmem [thread:$0]  %s1031_s4, 16, %s35_s22, [#allocation4]  }
  0x11   :  { %768 = dma.done.wait [#allocation4], 16  }
  0x12   :  { %769 = vsyncadd [#allocation4], 4294967280  ;;  %v771_v0 = vmov 0.0   ;;  %vm772_vm0 = vmmov 0   ;;  %v716_v1 = vld [vmem:[%s1028_s1] sm:$0xff]   ;;  %v717_v2 = vld [vmem:[%s1028_s1 + $0x8] sm:$0xff]  }
  0x13   :  { %593 = vmatprep.subr.bf16.mxu0 %v771_v0  ;;  %609 = vmatprep.mubr.msk.bf16.mxu0 %vm772_vm0, %v771_v0  ;;  %v718_v3 = vld [vmem:[%s1028_s1 + $0x10] sm:$0xff]   ;;  %v719_v4 = vld [vmem:[%s1028_s1 + $0x18] sm:$0xff]   ;;  %v724_v5 = vld [vmem:[%s1030_s3] sm:$0xff]   ;;  %v773_v44 = vmov 0.0|0.0   ;;  %vm505_vm1 = vcmask 7168  }
  0x14   :  { %613 = vmatprep.subr.bf16.mxu1 %v771_v0  ;;  %629 = vmatprep.mubr.msk.bf16.mxu1 %vm772_vm0, %v771_v0  ;;  %v720_v6 = vld [vmem:[%s1028_s1 + $0x20] sm:$0xff]   ;;  %v721_v7 = vld [vmem:[%s1028_s1 + $0x28] sm:$0xff]   ;;  %v722_v8 = vld [vmem:[%s1028_s1 + $0x30] sm:$0xff]  }
  0x15   :  { %594 = vmatpush3.bf16.msra.mxu0 %v716_v1  ;;  %614 = vmatpush3.bf16.msra.mxu1 %v724_v5  ;;  %v723_v9 = vld [vmem:[%s1028_s1 + $0x38] sm:$0xff]   ;;  %v54_v10 = vld [vmem:[%s1027_s0] sm:$0xf]  ;;  %v725_v11 = vld [vmem:[%s1030_s3 + $0x8] sm:$0xff]  }
  0x16   :  { %595 = vmatprep.subr.bf16.mxu0 %v771_v0  ;;  %615 = vmatprep.subr.bf16.mxu1 %v771_v0  ;;  %v726_v12 = vld [vmem:[%s1030_s3 + $0x10] sm:$0xff]   ;;  %v727_v13 = vld [vmem:[%s1030_s3 + $0x18] sm:$0xff]   ;;  %v728_v14 = vld [vmem:[%s1030_s3 + $0x20] sm:$0xff]  }
  0x17   :  { %v729_v15 = vld [vmem:[%s1030_s3 + $0x28] sm:$0xff]   ;;  %v730_v16 = vld [vmem:[%s1030_s3 + $0x30] sm:$0xff]   ;;  %v731_v17 = vld [vmem:[%s1030_s3 + $0x38] sm:$0xff]  }
  0x18   :  { %v732_v18 = vld [vmem:[%s1032_s5] sm:$0xff]   ;;  %v733_v35 = vld [vmem:[%s1032_s5 + $0x8] sm:$0xff]   ;;  %v734_v36 = vld [vmem:[%s1032_s5 + $0x10] sm:$0xff]  }
  0x19   :  { %596 = vmatpush3.bf16.msra.mxu0 %v717_v2  ;;  %616 = vmatpush3.bf16.msra.mxu1 %v725_v11  ;;  %v522_v19 = vld [vmem:[%s1029_s2] ss:$0 sm:$0xff]  ;;  %v735_v37 = vld [vmem:[%s1032_s5 + $0x18] sm:$0xff]   ;;  %v737_v39 = vld [vmem:[%s1032_s5 + $0x28] sm:$0xff]  }
  0x1a   :  { %597 = vmatprep.subr.bf16.mxu0 %v771_v0  ;;  %617 = vmatprep.subr.bf16.mxu1 %v771_v0  ;;  %v736_v38 = vld [vmem:[%s1032_s5 + $0x20] sm:$0xff]   ;;  %v738_v40 = vld [vmem:[%s1032_s5 + $0x30] sm:$0xff]   ;;  %v739_v41 = vld [vmem:[%s1032_s5 + $0x38] sm:$0xff]  }
  0x1b   :  { %v417_v42 = vld [vmem:[%s1034_s7] sm:$0xff]  ;;  %v418_v43 = vld [vmem:[%s1034_s7 + $0x8] sm:$0xff]  ;;  %v419_v62 = vld [vmem:[%s1034_s7 + $0x10] sm:$0xff] }
  0x1c   :  { %v689_v45 = vpack.c.bf16 %v418_v43, %v417_v42  ;;  %v531_v46 = vld [vmem:[#allocation3] ss:$0 sm:$0xff]  ;;  %v420_v63 = vld [vmem:[%s1034_s7 + $0x18] sm:$0xff]  ;;  %v422_v2 = vld [vmem:[%s1034_s7 + $0x28] sm:$0xff] }
  0x1d   :  { %598 = vmatpush3.bf16.msra.mxu0 %v718_v3  ;;  %618 = vmatpush3.bf16.msra.mxu1 %v726_v12  ;;  %v421_v1 = vld [vmem:[%s1034_s7 + $0x20] sm:$0xff]  ;;  %v424_v5 = vld [vmem:[%s1034_s7 + $0x38] sm:$0xff] }
  0x1e   :  { %599 = vmatprep.subr.bf16.mxu0 %v771_v0  ;;  %619 = vmatprep.subr.bf16.mxu1 %v771_v0  ;;  %v695_v3 = vpack.c.bf16 %v422_v2, %v421_v1  ;;  %v428_v11 = vld [vmem:[%s1034_s7 + $0x58] sm:$0xff] }
  0x21   :  { %600 = vmatpush3.bf16.msra.mxu0 %v719_v4  ;;  %620 = vmatpush3.bf16.msra.mxu1 %v727_v13  ;;  %v423_v4 = vld [vmem:[%s1034_s7 + $0x30] sm:$0xff]  ;;  %v429_v13 = vld [vmem:[%s1034_s7 + $0x60] sm:$0xff] }
  0x22   :  { %601 = vmatprep.subr.bf16.mxu0 %v771_v0  ;;  %621 = vmatprep.subr.bf16.mxu1 %v771_v0 }
  0x25   :  { %602 = vmatpush3.bf16.msra.mxu0 %v720_v6  ;;  %622 = vmatpush3.bf16.msra.mxu1 %v728_v14  ;;  %v698_v6 = vpack.c.bf16 %v424_v5, %v423_v4  ;;  %v430_v14 = vld [vmem:[%s1034_s7 + $0x68] sm:$0xff] }
  0x26   :  { %603 = vmatprep.subr.bf16.mxu0 %v771_v0  ;;  %623 = vmatprep.subr.bf16.mxu1 %v771_v0 }
  0x29   :  { %604 = vmatpush3.bf16.msra.mxu0 %v721_v7  ;;  %624 = vmatpush3.bf16.msra.mxu1 %v729_v15  ;;  %v425_v7 = vld [vmem:[%s1034_s7 + $0x40] sm:$0xff]  ;;  %v707_v15 = vpack.c.bf16 %v430_v14, %v429_v13 }
  0x2a   :  { %605 = vmatprep.subr.bf16.mxu0 %v771_v0  ;;  %625 = vmatprep.subr.bf16.mxu1 %v771_v0 }
  0x2d   :  { %606 = vmatpush3.bf16.msra.mxu0 %v722_v8  ;;  %626 = vmatpush3.bf16.msra.mxu1 %v730_v16  ;;  %v426_v8 = vld [vmem:[%s1034_s7 + $0x48] sm:$0xff]  ;;  %v431_v16 = vld [vmem:[%s1034_s7 + $0x70] sm:$0xff] }
  0x2e   :  { %607 = vmatprep.subr.bf16.mxu0 %v771_v0  ;;  %627 = vmatprep.subr.bf16.mxu1 %v771_v0 }
  0x31   :  { %608 = vmatpush3.bf16.msra.mxu0 %v723_v9  ;;  %628 = vmatpush3.bf16.msra.mxu1 %v731_v17  ;;  %v701_v9 = vpack.c.bf16 %v426_v8, %v425_v7  ;;  %v432_v17 = vld [vmem:[%s1034_s7 + $0x78] sm:$0xff] }
  0x32   :  { %633 = vmatprep.subr.bf16.mxu0 %v771_v0  ;;  %688 = vmatprep.subr.bf16.mxu1 %v773_v44 }
  0x34   :  { %610 = vmatmul.mubr.bf16.vlgmr.msra.gmra.mrb[0].mxu0 %v54_v10  ;;  %v427_v10 = vld [vmem:[%s1034_s7 + $0x50] sm:$0xff] }
  0x35   :  { %649 = vmatprep.mubr.msk.bf16.mxu0 %vm772_vm0, %v771_v0  ;;  %634 = vmatpush3.bf16.msra.mxu0 %v732_v18  ;;  %v704_v12 = vpack.c.bf16 %v428_v11, %v427_v10  ;;  %v710_v18 = vpack.c.bf16 %v432_v17, %v431_v16 }
  0x36   :  { %635 = vmatprep.subr.bf16.mxu0 %v771_v0 }
  0x39   :  { %636 = vmatpush3.bf16.msra.mxu0 %v733_v35 }
  0x3a   :  { %637 = vmatprep.subr.bf16.mxu0 %v771_v0 }
  0x3d   :  { %638 = vmatpush3.bf16.msra.mxu0 %v734_v36  ;;  %v507_v36 = vld [vmem:[%s1036_s9] sm:$0xff] }
  0x3e   :  { %639 = vmatprep.subr.bf16.mxu0 %v771_v0 }
  0x41   :  { %640 = vmatpush3.bf16.msra.mxu0 %v735_v37 }
  0x42   :  { %641 = vmatprep.subr.bf16.mxu0 %v771_v0 }
  0x45   :  { %642 = vmatpush3.bf16.msra.mxu0 %v736_v38 }
  0x46   :  { %643 = vmatprep.subr.bf16.mxu0 %v771_v0 }
  0x49   :  { %644 = vmatpush3.bf16.msra.mxu0 %v737_v39  ;;  %v509_v39 = vld [vmem:[%s1037_s10] sm:$0xff] }
  0x4a   :  { %645 = vmatprep.subr.bf16.mxu0 %v771_v0 }
  0x4d   :  { %646 = vmatpush3.bf16.msra.mxu0 %v738_v40 }
  0x4e   :  { %647 = vmatprep.subr.bf16.mxu0 %v771_v0 }
  0x51   :  { %648 = vmatpush3.bf16.msra.mxu0 %v739_v41 }
 0x107   :  { %v160_v20 = vpop.f32.mrb[0].mxu0 }
 0x108   :  { %v161_v21 = vadd.f32 %v522_v19, %v160_v20  ;;  %v611_v22 = vpop.f32.mrb[1].mxu0  ;;  %v540_v19 = vld [vmem:[%s1033_s6] ss:$0 sm:$0xff] }
 0x109   :  { %v163_v23 = vpop.f32.mrb[2].mxu0 }
 0x10a   :  { %v167_v24 = vmul.f32 0.044715, %v161_v21  ;;  %v612_v25 = vpop.f32.mrb[3].mxu0  ;;  %v166_v31 = vmul.f32 0.5, %v161_v21 }
 0x10c   :  { %v168_v26 = vmul.f32 %v167_v24, %v161_v21 }
 0x10e   :  { %v169_v27 = vmul.f32 %v168_v26, %v161_v21 }
 0x110   :  { %v170_v28 = vadd.f32 %v169_v27, %v161_v21 }
 0x112   :  { %v171_v29 = vmul.f32 0.7978846, %v170_v28 }
 0x114   :  { %740 = vtanh.f32 %v171_v29 }
 0x11e   :  { %v741_v30 = vpop.eup %740 }
 0x11f   :  { %v173_v32 = vadd.f32 1.0, %v741_v30 }
 0x121   :  { %v174_v33 = vmul.f32 %v173_v32, %v166_v31 }
 0x123   :  { %v175_v34 = vpack.c.bf16 %v174_v33, %v174_v33 }
 0x125   :  { %630 = vmatmul.mubr.bf16.vlgmr.msra.gmra.mrb[0].mxu1 %v175_v34  ;;  %v434_v34 = vstv %s1035_s8 }
 0x126   :  { %685 = vmatprep.mubr.msk.f32.mxu1 %vm772_vm0, %v771_v0  ;;  %690 = vmatpush3.bf16.msra.mxu1 %v689_v45  ;;  %v692_v0 = vpack.c.bf16 %v420_v63, %v419_v62 }
 0x127   :  { %691 = vmatprep.subr.bf16.mxu1 %v773_v44 }
 0x12a   :  { %693 = vmatpush3.bf16.msra.mxu1 %v692_v0 }
 0x12b   :  { %694 = vmatprep.subr.bf16.mxu1 %v773_v44 }
 0x12e   :  { %696 = vmatpush3.bf16.msra.mxu1 %v695_v3 }
 0x12f   :  { %697 = vmatprep.subr.bf16.mxu1 %v773_v44 }
 0x132   :  { %699 = vmatpush3.bf16.msra.mxu1 %v698_v6 }
 0x133   :  { %700 = vmatprep.subr.bf16.mxu1 %v773_v44 }
 0x136   :  { %702 = vmatpush3.bf16.msra.mxu1 %v701_v9 }
 0x137   :  { %703 = vmatprep.subr.bf16.mxu1 %v773_v44 }
 0x13a   :  { %705 = vmatpush3.bf16.msra.mxu1 %v704_v12 }
 0x13b   :  { %706 = vmatprep.subr.bf16.mxu1 %v773_v44 }
 0x13e   :  { %708 = vmatpush3.bf16.msra.mxu1 %v707_v15 }
 0x13f   :  { %709 = vmatprep.subr.bf16.mxu1 %v773_v44 }
 0x142   :  { %711 = vmatpush3.bf16.msra.mxu1 %v710_v18 }
 0x1f8   :  { %v281_v47 = vpop.f32.mrb[0].mxu1 }
 0x1f9   :  { %v282_v48 = vadd.f32 %v531_v46, %v281_v47  ;;  %v631_v49 = vpop.f32.mrb[1].mxu1 }
 0x1fa   :  { %v284_v50 = vpop.f32.mrb[2].mxu1 }
 0x1fb   :  { %v288_v51 = vmul.f32 0.044715, %v282_v48  ;;  %v632_v52 = vpop.f32.mrb[3].mxu1  ;;  %v287_v58 = vmul.f32 0.5, %v282_v48 }
 0x1fd   :  { %v289_v53 = vmul.f32 %v288_v51, %v282_v48 }
 0x1ff   :  { %v290_v54 = vmul.f32 %v289_v53, %v282_v48 }
 0x201   :  { %v291_v55 = vadd.f32 %v290_v54, %v282_v48 }
 0x203   :  { %v292_v56 = vmul.f32 0.7978846, %v291_v55 }
 0x205   :  { %742 = vtanh.f32 %v292_v56 }
 0x20f   :  { %v743_v57 = vpop.eup %742 }
 0x210   :  { %v294_v59 = vadd.f32 1.0, %v743_v57 }
 0x212   :  { %v295_v60 = vmul.f32 %v294_v59, %v287_v58 }
 0x214   :  { %v296_v61 = vpack.c.bf16 %v295_v60, %v295_v60 }
 0x216   :  { %650 = vmatmul.mubr.bf16.vlgmr.msra.gmra.mrb[4].mxu0 %v296_v61 }
 0x2e9   :  { %v402_v20 = vpop.f32.mrb[4].mxu0 }
 0x2ea   :  { %v403_v21 = vadd.f32 %v540_v19, %v402_v20  ;;  %v651_v22 = vpop.f32.mrb[5].mxu0 }
 0x2eb   :  { %v405_v23 = vpop.f32.mrb[6].mxu0 }
 0x2ec   :  { %v409_v24 = vmul.f32 0.044715, %v403_v21  ;;  %v652_v25 = vpop.f32.mrb[7].mxu0  ;;  %v408_v31 = vmul.f32 0.5, %v403_v21 }
 0x2ee   :  { %v410_v26 = vmul.f32 %v409_v24, %v403_v21 }
 0x2f0   :  { %v411_v27 = vmul.f32 %v410_v26, %v403_v21 }
 0x2f2   :  { %v412_v28 = vadd.f32 %v411_v27, %v403_v21 }
 0x2f4   :  { %v413_v29 = vmul.f32 0.7978846, %v412_v28 }
 0x2f6   :  { %744 = vtanh.f32 %v413_v29 }
 0x300   :  { %v745_v30 = vpop.eup %744 }
 0x301   :  { %v415_v32 = vadd.f32 1.0, %v745_v30 }
 0x303   :  { %v416_v33 = vmul.f32 %v415_v32, %v408_v31 }
 0x305   :  { %686 = vmatmul.mubr.f32.vlgmr.msra.gmra.mrb[4].mxu1 %v416_v33 }
 0x3d8   :  { %v501_v35 = vpop.f32.mrb[4].mxu1 }
 0x3d9   :  { %v502_v37 = vadd.f32 %v501_v35, %v434_v34  ;;  %v687_v38 = vpop.f32.mrb[5].mxu1 }
 0x3db   :  { %506 = vst.msk [vmem:[%s1038_s11] sm:$0xff] %vm505_vm1, %v502_v37  ;;  %v508_v40 = vsub.f32 %v502_v37, %v507_v36 }
 0x3dd   :  { %v510_v41 = vmul.f32 %v509_v39, %v508_v40 }
 0x3df   :  { %v511_v42 = vmul.f32 %v510_v41, %v508_v40 }
 0x3e1   :  { %512 = vst.msk [vmem:[%s1039_s12] sm:$0xff] %vm505_vm1, %v511_v42 }
 0x3e2   :  { %521 = vsyncpa [#allocation4], 1 }

</bundles_post_ra>
